<compile_context>
chip_gen: v7x
topology: tpu7x:2x2x1
jax: 0.10.0
libtpu: 0.0.40
codegen_flags: <defaults>
</compile_context>

<pallas_src>
import jax
import jax.numpy as jnp
from jax.experimental import pallas as pl
from jax.experimental.pallas import tpu as pltpu


def _round_up(x: int, m: int) -> int:
    return (x + m - 1) // m * m


@jax.jit
def basicconv2_forward(x_nchw, conv_w, conv_b, bn_gamma, bn_beta, se_w1, se_w2):
    """Forward pass of `basicconv2`.

    Args (PyTorch layouts):
      x_nchw : (N, Cin, H, W) float32
      conv_w : (Cout, Cin, 4, 4) conv weight
      conv_b : (Cout,) conv bias -- mathematically cancels under training-mode
               BatchNorm (mean subtraction), so it is folded away (never read).
      bn_gamma, bn_beta : (Cout,) BN affine parameters
      se_w1  : (Cout, Cout//16)  == fc1.weight.T (bias-free)
      se_w2  : (Cout//16, Cout)  == fc2.weight.T (bias-free)
    Returns: (N, Cout, H//2, W//2) float32
    """
    del conv_b  # folded into train-mode BN (exact cancellation)

    N, Cin, H, W = x_nchw.shape
    Cout = conv_w.shape[0]
    hidden = se_w1.shape[1]
    assert H % 2 == 0 and W % 2 == 0, "kernel=4, stride=2, pad=1 expects even H, W"
    Ho, Wo = H // 2, W // 2
    Hp2, Wp2 = Ho + 1, Wo + 1            # phase-split spatial dims of the padded input
    C4 = 4 * Cin                         # channels after space-to-depth
    eps = 1e-5
    f32 = jnp.float32

    # Lane/sublane friendly padded sizes.
    Coutp = _round_up(Cout, 128)         # lane-dense output channels
    C4p = _round_up(C4, 8)               # conv contraction dim (sublane multiple)
    Hse = _round_up(hidden, 8)           # SE hidden dim
    R_out = Ho * Wp2                     # conv rows kept per image ("padded-row" space)
    Rp = _round_up(Hp2 * Wp2 + 1, 8)     # input rows per image incl. headroom for tap shifts

    # ---------------- wrapper glue (pure layout, ~1x input bytes) ----------------
    # NCHW -> NHWC, zero-pad spatial by 1 (conv padding=1).
    xt = jnp.transpose(x_nchw, (0, 2, 3, 1)).astype(f32)
    xp = jnp.pad(xt, ((0, 0), (1, 1), (1, 1), (0, 0)))
    # Space-to-depth by the stride: 4x4/stride-2 conv == 2x2/stride-1 conv on 4*Cin channels.
    xs = xp.reshape(N, Hp2, 2, Wp2, 2, Cin)
    xs = jnp.transpose(xs, (0, 1, 3, 2, 4, 5)).reshape(N, Hp2, Wp2, C4)
    # Flatten spatial to rows and pad rows/channels so every in-kernel slice is 2-D.
    xs = xs.reshape(N, Hp2 * Wp2, C4)
    xs = jnp.pad(xs, ((0, 0), (0, Rp - Hp2 * Wp2), (0, C4p - C4)))
    xs = xs.astype(jnp.bfloat16)                          # MXU operand (f32 accumulate)

    # Conv weight -> 4 per-tap (C4p, Coutp) matrices; tap = 2x2 shift in phase space.
    wt = jnp.transpose(conv_w, (2, 3, 1, 0))              # (dy, dx, ci, co)
    wt = wt.reshape(2, 2, 2, 2, Cin, Cout)                # (qy, py, qx, px, ci, co)
    wt = jnp.transpose(wt, (0, 2, 1, 3, 4, 5)).reshape(2, 2, C4, Cout)
    wt = jnp.pad(wt, ((0, 0), (0, 0), (0, C4p - C4), (0, Coutp - Cout)))
    w_eff = wt.reshape(4, C4p, Coutp).astype(jnp.bfloat16)
    shifts = [0, 1, Wp2, Wp2 + 1]                         # row shift per tap (qy*Wp2 + qx)

    # BN / SE params, zero-padded to Coutp so padded channels stay exactly zero.
    gamma_p = jnp.pad(bn_gamma.astype(f32), (0, Coutp - Cout)).reshape(1, Coutp)
    beta_p = jnp.pad(bn_beta.astype(f32), (0, Coutp - Cout)).reshape(1, Coutp)
    w1_p = jnp.pad(se_w1.astype(f32), ((0, Coutp - Cout), (0, Hse - hidden)))
    w2_p = jnp.pad(se_w2.astype(f32), ((0, Hse - hidden), (0, Coutp - Cout)))

    # Validity mask of the padded-row conv layout: row r -> (i, j) = (r//Wp2, r%Wp2);
    # columns j == Wo fall off the image and are excluded from all statistics.
    rows = jnp.arange(R_out)
    mask = ((rows % Wp2) < Wo).astype(f32).reshape(R_out, 1)

    n_valid = float(N * Ho * Wo)
    inv_pool = 1.0 / float(Ho * Wo)

    # --------------------- pass 1: conv + global BN statistics ---------------------
    def conv_stats_kernel(x_ref, w_ref, m_ref, conv_ref, stats_ref, sum_ref, ssq_ref):
        n = pl.program_id(0)

        @pl.when(n == 0)
        def _init():
            sum_ref[...] = jnp.zeros_like(sum_ref)
            ssq_ref[...] = jnp.zeros_like(ssq_ref)

        # 4x4 stride-2 conv == 4 accumulated 2-D matmuls over row-shifted views
        # of the space-to-depth input (no im2col, no in-kernel reshapes).
        acc = jnp.dot(x_ref[0, shifts[0]:shifts[0] + R_out, :], w_ref[0],
                      preferred_element_type=f32)
        for t in range(1, 4):
            sh = shifts[t]
            acc = acc + jnp.dot(x_ref[0, sh:sh + R_out, :], w_ref[t],
                                preferred_element_type=f32)
        conv_ref[0] = acc

        # Accumulate global (per-channel) BatchNorm statistics over valid rows.
        m = m_ref[...]
        sum_ref[...] += jnp.sum(acc * m, axis=0, keepdims=True)
        ssq_ref[...] += jnp.sum(acc * acc * m, axis=0, keepdims=True)

        @pl.when(n == pl.num_programs(0) - 1)
        def _finalize():
            mean = sum_ref[...] * (1.0 / n_valid)
            var = jnp.maximum(ssq_ref[...] * (1.0 / n_valid) - mean * mean, 0.0)
            rstd = jax.lax.rsqrt(var + eps)
            stats_ref[0:1, :] = mean
            stats_ref[1:2, :] = rstd

    conv_buf, stats = pl.pallas_call(
        conv_stats_kernel,
        out_shape=(
            jax.ShapeDtypeStruct((N, R_out, Coutp), f32),    # conv output (padded-row layout)
            jax.ShapeDtypeStruct((2, Coutp), f32),           # row0 = mean, row1 = rstd
        ),
        grid=(N,),
        in_specs=[
            pl.BlockSpec((1, Rp, C4p), lambda n: (n, 0, 0)),
            pl.BlockSpec((4, C4p, Coutp), lambda n: (0, 0, 0)),
            pl.BlockSpec((R_out, 1), lambda n: (0, 0)),
        ],
        out_specs=(
            pl.BlockSpec((1, R_out, Coutp), lambda n: (n, 0, 0)),
            pl.BlockSpec((2, Coutp), lambda n: (0, 0)),
        ),
        scratch_shapes=[
            pltpu.VMEM((1, Coutp), f32),
            pltpu.VMEM((1, Coutp), f32),
        ],
        compiler_params=pltpu.CompilerParams(
            dimension_semantics=("arbitrary",),              # stats accumulate across images
            vmem_limit_bytes=32 * 1024 * 1024,
        ),
        cost_estimate=pl.CostEstimate(
            flops=2 * N * 4 * R_out * C4p * Coutp,
            transcendentals=0,
            bytes_accessed=(N * Rp * C4p * 2 + 4 * C4p * Coutp * 2
                            + N * R_out * Coutp * 4 + 2 * Coutp * 4 + R_out * 4),
        ),
    )(xs, w_eff, mask)

    # ------------------ pass 2: BN apply + ReLU + SE (per image) ------------------
    def bn_se_kernel(conv_ref, stats_ref, gamma_ref, beta_ref, w1_ref, w2_ref, m_ref, out_ref):
        c = conv_ref[0]                                      # (R_out, Coutp) f32
        mean = stats_ref[0:1, :]
        rstd = stats_ref[1:2, :]
        y = (c - mean) * (rstd * gamma_ref[...]) + beta_ref[...]
        y = jnp.maximum(y, 0.0)                              # ReLU
        # SE: global average pool over valid spatial positions of this image.
        pooled = jnp.sum(y * m_ref[...], axis=0, keepdims=True) * inv_pool     # (1, Coutp)
        hid = jnp.maximum(
            jnp.dot(pooled, w1_ref[...], preferred_element_type=f32), 0.0)     # (1, Hse)
        scale = jax.nn.sigmoid(
            jnp.dot(hid, w2_ref[...], preferred_element_type=f32))             # (1, Coutp)
        out_ref[0] = (y * scale).astype(out_ref.dtype)

    y_out = pl.pallas_call(
        bn_se_kernel,
        out_shape=jax.ShapeDtypeStruct((N, R_out, Coutp), f32),
        grid=(N,),
        in_specs=[
            pl.BlockSpec((1, R_out, Coutp), lambda n: (n, 0, 0)),   # conv buffer (aliased)
            pl.BlockSpec((2, Coutp), lambda n: (0, 0)),
            pl.BlockSpec((1, Coutp), lambda n: (0, 0)),
            pl.BlockSpec((1, Coutp), lambda n: (0, 0)),
            pl.BlockSpec((Coutp, Hse), lambda n: (0, 0)),
            pl.BlockSpec((Hse, Coutp), lambda n: (0, 0)),
            pl.BlockSpec((R_out, 1), lambda n: (0, 0)),
        ],
        out_specs=pl.BlockSpec((1, R_out, Coutp), lambda n: (n, 0, 0)),
        input_output_aliases={0: 0},                         # write in place of conv buffer
        compiler_params=pltpu.CompilerParams(
            dimension_semantics=("parallel",),               # per-image independent (megacore)
            vmem_limit_bytes=32 * 1024 * 1024,
        ),
        cost_estimate=pl.CostEstimate(
            flops=8 * N * R_out * Coutp + 4 * N * Coutp * Hse,
            transcendentals=N * Coutp,
            bytes_accessed=2 * N * R_out * Coutp * 4,
        ),
    )(conv_buf, stats, gamma_p, beta_p, w1_p, w2_p, mask)

    # Drop channel padding and the invalid conv column, restore NCHW.
    y = y_out[:, :, :Cout].reshape(N, Ho, Wp2, Cout)[:, :, :Wo, :]
    return jnp.transpose(y, (0, 3, 1, 2))


def _reference(x, conv_w, conv_b, gamma, beta, w1, w2):
    """Pure-JAX f32 reference matching the PyTorch module (training-mode BN)."""
    eps = 1e-5
    conv = jax.lax.conv_general_dilated(
        x, conv_w, window_strides=(2, 2), padding=((1, 1), (1, 1)),
        dimension_numbers=("NCHW", "OIHW", "NCHW"),
        precision=jax.lax.Precision.HIGHEST)
    conv = conv + conv_b[None, :, None, None]
    mean = jnp.mean(conv, axis=(0, 2, 3), keepdims=True)
    var = jnp.mean((conv - mean) ** 2, axis=(0, 2, 3), keepdims=True)
    y = (conv - mean) * jax.lax.rsqrt(var + eps)
    y = y * gamma[None, :, None, None] + beta[None, :, None, None]
    y = jnp.maximum(y, 0.0)
    pooled = jnp.mean(y, axis=(2, 3))                       # (N, Cout)
    hid = jnp.maximum(pooled @ w1, 0.0)
    scale = jax.nn.sigmoid(hid @ w2)                        # (N, Cout)
    return y * scale[:, :, None, None]


if __name__ == "__main__":
    # in_c=4, out_c=32 (SE reduction=16 needs out_c >= 16), batch=2, spatial 16x16.
    N, Cin, Cout, H, W = 2, 4, 32, 16, 16
    key = jax.random.PRNGKey(0)
    kx, kw, kb, kg, kbe, k1, k2 = jax.random.split(key, 7)

    x = jax.random.normal(kx, (N, Cin, H, W), jnp.float32)
    conv_w = jax.random.normal(kw, (Cout, Cin, 4, 4), jnp.float32) * 0.1   # torch conv weight
    conv_b = jax.random.normal(kb, (Cout,), jnp.float32) * 0.1             # torch conv bias
    gamma = 1.0 + 0.1 * jax.random.normal(kg, (Cout,), jnp.float32)        # BN weight
    beta = 0.1 * jax.random.normal(kbe, (Cout,), jnp.float32)              # BN bias
    w1 = jax.random.normal(k1, (Cout, Cout // 16), jnp.float32) * 0.2      # SE fc1.weight.T
    w2 = jax.random.normal(k2, (Cout // 16, Cout), jnp.float32) * 0.2      # SE fc2.weight.T

    out = basicconv2_forward(x, conv_w, conv_b, gamma, beta, w1, w2)
    out = jax.block_until_ready(out)
    assert out.shape == (N, Cout, H // 2, W // 2)

    ref = _reference(x, conv_w, conv_b, gamma, beta, w1, w2)
    err = float(jnp.max(jnp.abs(out - ref)))
    assert err < 7.5e-2, f"max abs error vs f32 reference = {err}"
    print("KERNEL_OK")
</pallas_src>

<mosaic_0001>
module attributes {stable_mosaic.version = 11 : i64} {
  func.func @conv_stats_kernel(%arg0: i32, %arg1: memref<1x88x16xbf16, #tpu.memory_space<vmem>>, %arg2: memref<4x16x128xbf16, #tpu.memory_space<vmem>>, %arg3: memref<72x1xf32, #tpu.memory_space<vmem>>, %arg4: memref<1x72x128xf32, #tpu.memory_space<vmem>>, %arg5: memref<2x128xf32, #tpu.memory_space<vmem>>, %arg6: memref<1x128xf32, #tpu.memory_space<vmem>>, %arg7: memref<1x128xf32, #tpu.memory_space<vmem>>) attributes {dimension_semantics = [#tpu.dimension_semantics<arbitrary>], iteration_bounds = array<i64: 2>, scalar_prefetch = 0 : i64, scratch_operands = 2 : i64, tpu.core_type = #tpu.core_type<tc>, window_params = [{transform_indices = @transform_0, window_bounds = array<i64: 1, 88, 16>}, {pipeline_mode = #tpu.pipeline_mode<synchronous>, transform_indices = @transform_1, window_bounds = array<i64: 4, 16, 128>}, {pipeline_mode = #tpu.pipeline_mode<synchronous>, transform_indices = @transform_2, window_bounds = array<i64: 72, 1>}, {transform_indices = @transform_3, window_bounds = array<i64: 1, 72, 128>}, {pipeline_mode = #tpu.pipeline_mode<synchronous>, transform_indices = @transform_4, window_bounds = array<i64: 2, 128>}]} {
    %c0_i32 = arith.constant 0 : i32
    %0 = arith.cmpi eq, %arg0, %c0_i32 : i32
    %1 = arith.extui %0 : i1 to i32
    %c0_i32_0 = arith.constant 0 : i32
    %2 = arith.cmpi ne, %1, %c0_i32_0 : i32
    scf.if %2 {
      %cst_38 = arith.constant 0.000000e+00 : f32
      %48 = vector.broadcast %cst_38 : f32 to vector<1x128xf32>
      %c0_39 = arith.constant 0 : index
      %c0_40 = arith.constant 0 : index
      %49 = vector.load %arg6[%c0_39, %c0_40] : memref<1x128xf32, #tpu.memory_space<vmem>>, vector<1x128xf32>
      tpu.vector_store %arg6[%c0_39, %c0_40], %48 {strides = array<i32>} : memref<1x128xf32, #tpu.memory_space<vmem>>, vector<1x128xf32>,
      %cst_41 = arith.constant 0.000000e+00 : f32
      %50 = vector.broadcast %cst_41 : f32 to vector<1x128xf32>
      %c0_42 = arith.constant 0 : index
      %c0_43 = arith.constant 0 : index
      %51 = vector.load %arg7[%c0_42, %c0_43] : memref<1x128xf32, #tpu.memory_space<vmem>>, vector<1x128xf32>
      tpu.vector_store %arg7[%c0_42, %c0_43], %50 {strides = array<i32>} : memref<1x128xf32, #tpu.memory_space<vmem>>, vector<1x128xf32>,
    } else {
    }
    %c0 = arith.constant 0 : index
    %c0_1 = arith.constant 0 : index
    %c0_2 = arith.constant 0 : index
    %3 = vector.load %arg1[%c0, %c0_1, %c0_2] : memref<1x88x16xbf16, #tpu.memory_space<vmem>>, vector<1x72x16xbf16>
    %4 = vector.shape_cast %3 : vector<1x72x16xbf16> to vector<72x16xbf16>
    %c0_3 = arith.constant 0 : index
    %c0_4 = arith.constant 0 : index
    %c0_5 = arith.constant 0 : index
    %5 = vector.load %arg2[%c0_3, %c0_4, %c0_5] : memref<4x16x128xbf16, #tpu.memory_space<vmem>>, vector<1x16x128xbf16>
    %6 = vector.shape_cast %5 : vector<1x16x128xbf16> to vector<16x128xbf16>
    %cst = arith.constant dense<0.000000e+00> : vector<72x128xf32>
    %7 = tpu.matmul %4, %6, %cst {dimension_numbers = #tpu.dot_dimension_numbers<[1], [0], [0], [1], [0, 0, 1, 1], [], []>} : vector<72x16xbf16>, vector<16x128xbf16>, vector<72x128xf32> -> vector<72x128xf32>
    %c0_6 = arith.constant 0 : index
    %c1 = arith.constant 1 : index
    %c0_7 = arith.constant 0 : index
    %8 = vector.load %arg1[%c0_6, %c1, %c0_7] : memref<1x88x16xbf16, #tpu.memory_space<vmem>>, vector<1x72x16xbf16>
    %9 = vector.shape_cast %8 : vector<1x72x16xbf16> to vector<72x16xbf16>
    %c1_8 = arith.constant 1 : index
    %c0_9 = arith.constant 0 : index
    %c0_10 = arith.constant 0 : index
    %10 = vector.load %arg2[%c1_8, %c0_9, %c0_10] : memref<4x16x128xbf16, #tpu.memory_space<vmem>>, vector<1x16x128xbf16>
    %11 = vector.shape_cast %10 : vector<1x16x128xbf16> to vector<16x128xbf16>
    %cst_11 = arith.constant dense<0.000000e+00> : vector<72x128xf32>
    %12 = tpu.matmul %9, %11, %cst_11 {dimension_numbers = #tpu.dot_dimension_numbers<[1], [0], [0], [1], [0, 0, 1, 1], [], []>} : vector<72x16xbf16>, vector<16x128xbf16>, vector<72x128xf32> -> vector<72x128xf32>
    %13 = arith.addf %7, %12 : vector<72x128xf32>
    %c0_12 = arith.constant 0 : index
    %c9 = arith.constant 9 : index
    %c0_13 = arith.constant 0 : index
    %14 = vector.load %arg1[%c0_12, %c9, %c0_13] : memref<1x88x16xbf16, #tpu.memory_space<vmem>>, vector<1x72x16xbf16>
    %15 = vector.shape_cast %14 : vector<1x72x16xbf16> to vector<72x16xbf16>
    %c2 = arith.constant 2 : index
    %c0_14 = arith.constant 0 : index
    %c0_15 = arith.constant 0 : index
    %16 = vector.load %arg2[%c2, %c0_14, %c0_15] : memref<4x16x128xbf16, #tpu.memory_space<vmem>>, vector<1x16x128xbf16>
    %17 = vector.shape_cast %16 : vector<1x16x128xbf16> to vector<16x128xbf16>
    %cst_16 = arith.constant dense<0.000000e+00> : vector<72x128xf32>
    %18 = tpu.matmul %15, %17, %cst_16 {dimension_numbers = #tpu.dot_dimension_numbers<[1], [0], [0], [1], [0, 0, 1, 1], [], []>} : vector<72x16xbf16>, vector<16x128xbf16>, vector<72x128xf32> -> vector<72x128xf32>
    %19 = arith.addf %13, %18 : vector<72x128xf32>
    %c0_17 = arith.constant 0 : index
    %c10 = arith.constant 10 : index
    %c0_18 = arith.constant 0 : index
    %20 = vector.load %arg1[%c0_17, %c10, %c0_18] : memref<1x88x16xbf16, #tpu.memory_space<vmem>>, vector<1x72x16xbf16>
    %21 = vector.shape_cast %20 : vector<1x72x16xbf16> to vector<72x16xbf16>
    %c3 = arith.constant 3 : index
    %c0_19 = arith.constant 0 : index
    %c0_20 = arith.constant 0 : index
    %22 = vector.load %arg2[%c3, %c0_19, %c0_20] : memref<4x16x128xbf16, #tpu.memory_space<vmem>>, vector<1x16x128xbf16>
    %23 = vector.shape_cast %22 : vector<1x16x128xbf16> to vector<16x128xbf16>
    %cst_21 = arith.constant dense<0.000000e+00> : vector<72x128xf32>
    %24 = tpu.matmul %21, %23, %cst_21 {dimension_numbers = #tpu.dot_dimension_numbers<[1], [0], [0], [1], [0, 0, 1, 1], [], []>} : vector<72x16xbf16>, vector<16x128xbf16>, vector<72x128xf32> -> vector<72x128xf32>
    %25 = arith.addf %19, %24 : vector<72x128xf32>
    %c0_22 = arith.constant 0 : index
    %c0_23 = arith.constant 0 : index
    %c0_24 = arith.constant 0 : index
    %26 = vector.load %arg4[%c0_22, %c0_23, %c0_24] : memref<1x72x128xf32, #tpu.memory_space<vmem>>, vector<1x72x128xf32>
    %27 = vector.shape_cast %26 : vector<1x72x128xf32> to vector<72x128xf32>
    %28 = vector.shape_cast %25 : vector<72x128xf32> to vector<1x72x128xf32>
    tpu.vector_store %arg4[%c0_22, %c0_23, %c0_24], %28 {strides = array<i32>} : memref<1x72x128xf32, #tpu.memory_space<vmem>>, vector<1x72x128xf32>,
    %c0_25 = arith.constant 0 : index
    %c0_26 = arith.constant 0 : index
    %29 = vector.load %arg3[%c0_25, %c0_26] : memref<72x1xf32, #tpu.memory_space<vmem>>, vector<72x1xf32>
    %c0_27 = arith.constant 0 : index
    %c0_28 = arith.constant 0 : index
    %30 = vector.load %arg6[%c0_27, %c0_28] : memref<1x128xf32, #tpu.memory_space<vmem>>, vector<1x128xf32>
    %31 = vector.broadcast %29 : vector<72x1xf32> to vector<72x128xf32>
    %32 = arith.mulf %25, %31 : vector<72x128xf32>
    %cst_29 = arith.constant dense<0.000000e+00> : vector<128xf32>
    %33 = vector.multi_reduction <add>, %32, %cst_29 [0] : vector<72x128xf32> to vector<128xf32>
    %34 = vector.shape_cast %33 : vector<128xf32> to vector<1x128xf32>
    %35 = arith.addf %30, %34 : vector<1x128xf32>
    %c0_30 = arith.constant 0 : index
    %c0_31 = arith.constant 0 : index
    %36 = vector.load %arg6[%c0_30, %c0_31] : memref<1x128xf32, #tpu.memory_space<vmem>>, vector<1x128xf32>
    tpu.vector_store %arg6[%c0_30, %c0_31], %35 {strides = array<i32>} : memref<1x128xf32, #tpu.memory_space<vmem>>, vector<1x128xf32>,
    %c0_32 = arith.constant 0 : index
    %c0_33 = arith.constant 0 : index
    %37 = vector.load %arg7[%c0_32, %c0_33] : memref<1x128xf32, #tpu.memory_space<vmem>>, vector<1x128xf32>
    %38 = arith.mulf %25, %25 : vector<72x128xf32>
    %39 = vector.broadcast %29 : vector<72x1xf32> to vector<72x128xf32>
    %40 = arith.mulf %38, %39 : vector<72x128xf32>
    %cst_34 = arith.constant dense<0.000000e+00> : vector<128xf32>
    %41 = vector.multi_reduction <add>, %40, %cst_34 [0] : vector<72x128xf32> to vector<128xf32>
    %42 = vector.shape_cast %41 : vector<128xf32> to vector<1x128xf32>
    %43 = arith.addf %37, %42 : vector<1x128xf32>
    %c0_35 = arith.constant 0 : index
    %c0_36 = arith.constant 0 : index
    %44 = vector.load %arg7[%c0_35, %c0_36] : memref<1x128xf32, #tpu.memory_space<vmem>>, vector<1x128xf32>
    tpu.vector_store %arg7[%c0_35, %c0_36], %43 {strides = array<i32>} : memref<1x128xf32, #tpu.memory_space<vmem>>, vector<1x128xf32>,
    %c1_i32 = arith.constant 1 : i32
    %45 = arith.cmpi eq, %arg0, %c1_i32 : i32
    %46 = arith.extui %45 : i1 to i32
    %c0_i32_37 = arith.constant 0 : i32
    %47 = arith.cmpi ne, %46, %c0_i32_37 : i32
    scf.if %47 {
      %c0_38 = arith.constant 0 : index
      %c0_39 = arith.constant 0 : index
      %48 = vector.load %arg6[%c0_38, %c0_39] : memref<1x128xf32, #tpu.memory_space<vmem>>, vector<1x128xf32>
      %cst_40 = arith.constant 7.812500e-03 : f32
      %49 = vector.broadcast %cst_40 : f32 to vector<1x128xf32>
      %50 = arith.mulf %48, %49 : vector<1x128xf32>
      %c0_41 = arith.constant 0 : index
      %c0_42 = arith.constant 0 : index
      %51 = vector.load %arg7[%c0_41, %c0_42] : memref<1x128xf32, #tpu.memory_space<vmem>>, vector<1x128xf32>
      %cst_43 = arith.constant 7.812500e-03 : f32
      %52 = vector.broadcast %cst_43 : f32 to vector<1x128xf32>
      %53 = arith.mulf %51, %52 : vector<1x128xf32>
      %54 = arith.mulf %50, %50 : vector<1x128xf32>
      %55 = arith.subf %53, %54 : vector<1x128xf32>
      %cst_44 = arith.constant 0.000000e+00 : f32
      %56 = vector.broadcast %cst_44 : f32 to vector<1x128xf32>
      %57 = arith.maximumf %55, %56 : vector<1x128xf32>
      %cst_45 = arith.constant 9.99999974E-6 : f32
      %58 = vector.broadcast %cst_45 : f32 to vector<1x128xf32>
      %59 = arith.addf %57, %58 : vector<1x128xf32>
      %60 = math.rsqrt %59 : vector<1x128xf32>
      %c0_46 = arith.constant 0 : index
      %c0_47 = arith.constant 0 : index
      %61 = vector.load %arg5[%c0_46, %c0_47] : memref<2x128xf32, #tpu.memory_space<vmem>>, vector<1x128xf32>
      tpu.vector_store %arg5[%c0_46, %c0_47], %50 {strides = array<i32>} : memref<2x128xf32, #tpu.memory_space<vmem>>, vector<1x128xf32>,
      %c1_48 = arith.constant 1 : index
      %c0_49 = arith.constant 0 : index
      %62 = vector.load %arg5[%c1_48, %c0_49] : memref<2x128xf32, #tpu.memory_space<vmem>>, vector<1x128xf32>
      tpu.vector_store %arg5[%c1_48, %c0_49], %60 {strides = array<i32>} : memref<2x128xf32, #tpu.memory_space<vmem>>, vector<1x128xf32>,
    } else {
    }
    return
  }
  func.func @transform_0(%arg0: i32) -> (i32, i32, i32) {
    %c0_i32 = arith.constant 0 : i32
    %c0_i32_0 = arith.constant 0 : i32
    %c0_i32_1 = arith.constant 0 : i32
    return %arg0, %c0_i32, %c0_i32_0 : i32, i32, i32
  }
  func.func @transform_1(%arg0: i32) -> (i32, i32, i32) {
    %c0_i32 = arith.constant 0 : i32
    %c0_i32_0 = arith.constant 0 : i32
    %c0_i32_1 = arith.constant 0 : i32
    %c0_i32_2 = arith.constant 0 : i32
    return %c0_i32, %c0_i32_0, %c0_i32_1 : i32, i32, i32
  }
  func.func @transform_2(%arg0: i32) -> (i32, i32) {
    %c0_i32 = arith.constant 0 : i32
    %c0_i32_0 = arith.constant 0 : i32
    %c0_i32_1 = arith.constant 0 : i32
    return %c0_i32, %c0_i32_0 : i32, i32
  }
  func.func @transform_3(%arg0: i32) -> (i32, i32, i32) {
    %c0_i32 = arith.constant 0 : i32
    %c0_i32_0 = arith.constant 0 : i32
    %c0_i32_1 = arith.constant 0 : i32
    return %arg0, %c0_i32, %c0_i32_0 : i32, i32, i32
  }
  func.func @transform_4(%arg0: i32) -> (i32, i32) {
    %c0_i32 = arith.constant 0 : i32
    %c0_i32_0 = arith.constant 0 : i32
    %c0_i32_1 = arith.constant 0 : i32
    return %c0_i32, %c0_i32_0 : i32, i32
  }
}

module attributes {stable_mosaic.version = 11 : i64} {
  func.func @bn_se_kernel(%arg0: i32, %arg1: memref<1x72x128xf32, #tpu.memory_space<vmem>>, %arg2: memref<2x128xf32, #tpu.memory_space<vmem>>, %arg3: memref<1x128xf32, #tpu.memory_space<vmem>>, %arg4: memref<1x128xf32, #tpu.memory_space<vmem>>, %arg5: memref<128x8xf32, #tpu.memory_space<vmem>>, %arg6: memref<8x128xf32, #tpu.memory_space<vmem>>, %arg7: memref<72x1xf32, #tpu.memory_space<vmem>>, %arg8: memref<1x72x128xf32, #tpu.memory_space<vmem>>) attributes {dimension_semantics = [#tpu.dimension_semantics<parallel>], iteration_bounds = array<i64: 2>, scalar_prefetch = 0 : i64, scratch_operands = 0 : i64, tpu.core_type = #tpu.core_type<tc>, window_params = [{transform_indices = @transform_0, window_bounds = array<i64: 1, 72, 128>}, {pipeline_mode = #tpu.pipeline_mode<synchronous>, transform_indices = @transform_1, window_bounds = array<i64: 2, 128>}, {pipeline_mode = #tpu.pipeline_mode<synchronous>, transform_indices = @transform_2, window_bounds = array<i64: 1, 128>}, {pipeline_mode = #tpu.pipeline_mode<synchronous>, transform_indices = @transform_3, window_bounds = array<i64: 1, 128>}, {pipeline_mode = #tpu.pipeline_mode<synchronous>, transform_indices = @transform_4, window_bounds = array<i64: 128, 8>}, {pipeline_mode = #tpu.pipeline_mode<synchronous>, transform_indices = @transform_5, window_bounds = array<i64: 8, 128>}, {pipeline_mode = #tpu.pipeline_mode<synchronous>, transform_indices = @transform_6, window_bounds = array<i64: 72, 1>}, {transform_indices = @transform_7, window_bounds = array<i64: 1, 72, 128>}]} {
    %c0 = arith.constant 0 : index
    %c0_0 = arith.constant 0 : index
    %c0_1 = arith.constant 0 : index
    %0 = vector.load %arg1[%c0, %c0_0, %c0_1] : memref<1x72x128xf32, #tpu.memory_space<vmem>>, vector<1x72x128xf32>
    %1 = vector.shape_cast %0 : vector<1x72x128xf32> to vector<72x128xf32>
    %c0_2 = arith.constant 0 : index
    %c0_3 = arith.constant 0 : index
    %2 = vector.load %arg2[%c0_2, %c0_3] : memref<2x128xf32, #tpu.memory_space<vmem>>, vector<1x128xf32>
    %c1 = arith.constant 1 : index
    %c0_4 = arith.constant 0 : index
    %3 = vector.load %arg2[%c1, %c0_4] : memref<2x128xf32, #tpu.memory_space<vmem>>, vector<1x128xf32>
    %4 = vector.broadcast %2 : vector<1x128xf32> to vector<72x128xf32>
    %5 = arith.subf %1, %4 : vector<72x128xf32>
    %c0_5 = arith.constant 0 : index
    %c0_6 = arith.constant 0 : index
    %6 = vector.load %arg3[%c0_5, %c0_6] : memref<1x128xf32, #tpu.memory_space<vmem>>, vector<1x128xf32>
    %7 = arith.mulf %3, %6 : vector<1x128xf32>
    %8 = vector.broadcast %7 : vector<1x128xf32> to vector<72x128xf32>
    %9 = arith.mulf %5, %8 : vector<72x128xf32>
    %c0_7 = arith.constant 0 : index
    %c0_8 = arith.constant 0 : index
    %10 = vector.load %arg4[%c0_7, %c0_8] : memref<1x128xf32, #tpu.memory_space<vmem>>, vector<1x128xf32>
    %11 = vector.broadcast %10 : vector<1x128xf32> to vector<72x128xf32>
    %12 = arith.addf %9, %11 : vector<72x128xf32>
    %cst = arith.constant 0.000000e+00 : f32
    %13 = vector.broadcast %cst : f32 to vector<72x128xf32>
    %14 = arith.maximumf %12, %13 : vector<72x128xf32>
    %c0_9 = arith.constant 0 : index
    %c0_10 = arith.constant 0 : index
    %15 = vector.load %arg7[%c0_9, %c0_10] : memref<72x1xf32, #tpu.memory_space<vmem>>, vector<72x1xf32>
    %16 = vector.broadcast %15 : vector<72x1xf32> to vector<72x128xf32>
    %17 = arith.mulf %14, %16 : vector<72x128xf32>
    %cst_11 = arith.constant dense<0.000000e+00> : vector<128xf32>
    %18 = vector.multi_reduction <add>, %17, %cst_11 [0] : vector<72x128xf32> to vector<128xf32>
    %19 = vector.shape_cast %18 : vector<128xf32> to vector<1x128xf32>
    %cst_12 = arith.constant 1.562500e-02 : f32
    %20 = vector.broadcast %cst_12 : f32 to vector<1x128xf32>
    %21 = arith.mulf %19, %20 : vector<1x128xf32>
    %c0_13 = arith.constant 0 : index
    %c0_14 = arith.constant 0 : index
    %22 = vector.load %arg5[%c0_13, %c0_14] : memref<128x8xf32, #tpu.memory_space<vmem>>, vector<128x8xf32>
    %cst_15 = arith.constant dense<0.000000e+00> : vector<1x8xf32>
    %23 = tpu.matmul %21, %22, %cst_15 {dimension_numbers = #tpu.dot_dimension_numbers<[1], [0], [0], [1], [0, 0, 1, 1], [], []>} : vector<1x128xf32>, vector<128x8xf32>, vector<1x8xf32> -> vector<1x8xf32>
    %cst_16 = arith.constant 0.000000e+00 : f32
    %24 = vector.broadcast %cst_16 : f32 to vector<1x8xf32>
    %25 = arith.maximumf %23, %24 : vector<1x8xf32>
    %c0_17 = arith.constant 0 : index
    %c0_18 = arith.constant 0 : index
    %26 = vector.load %arg6[%c0_17, %c0_18] : memref<8x128xf32, #tpu.memory_space<vmem>>, vector<8x128xf32>
    %cst_19 = arith.constant dense<0.000000e+00> : vector<1x128xf32>
    %27 = tpu.matmul %25, %26, %cst_19 {dimension_numbers = #tpu.dot_dimension_numbers<[1], [0], [0], [1], [0, 0, 1, 1], [], []>} : vector<1x8xf32>, vector<8x128xf32>, vector<1x128xf32> -> vector<1x128xf32>
    %28 = arith.negf %27 : vector<1x128xf32>
    %29 = math.exp %28 : vector<1x128xf32>
    %cst_20 = arith.constant 1.000000e+00 : f32
    %30 = vector.broadcast %cst_20 : f32 to vector<1x128xf32>
    %31 = arith.addf %30, %29 : vector<1x128xf32>
    %32 = arith.divf %30, %31 : vector<1x128xf32>
    %33 = vector.broadcast %32 : vector<1x128xf32> to vector<72x128xf32>
    %34 = arith.mulf %14, %33 : vector<72x128xf32>
    %c0_21 = arith.constant 0 : index
    %c0_22 = arith.constant 0 : index
    %c0_23 = arith.constant 0 : index
    %35 = vector.load %arg8[%c0_21, %c0_22, %c0_23] : memref<1x72x128xf32, #tpu.memory_space<vmem>>, vector<1x72x128xf32>
    %36 = vector.shape_cast %35 : vector<1x72x128xf32> to vector<72x128xf32>
    %37 = vector.shape_cast %34 : vector<72x128xf32> to vector<1x72x128xf32>
    tpu.vector_store %arg8[%c0_21, %c0_22, %c0_23], %37 {strides = array<i32>} : memref<1x72x128xf32, #tpu.memory_space<vmem>>, vector<1x72x128xf32>,
    return
  }
  func.func @transform_0(%arg0: i32) -> (i32, i32, i32) {
    %c0_i32 = arith.constant 0 : i32
    %c0_i32_0 = arith.constant 0 : i32
    %c0_i32_1 = arith.constant 0 : i32
    return %arg0, %c0_i32, %c0_i32_0 : i32, i32, i32
  }
  func.func @transform_1(%arg0: i32) -> (i32, i32) {
    %c0_i32 = arith.constant 0 : i32
    %c0_i32_0 = arith.constant 0 : i32
    %c0_i32_1 = arith.constant 0 : i32
    return %c0_i32, %c0_i32_0 : i32, i32
  }
  func.func @transform_2(%arg0: i32) -> (i32, i32) {
    %c0_i32 = arith.constant 0 : i32
    %c0_i32_0 = arith.constant 0 : i32
    %c0_i32_1 = arith.constant 0 : i32
    return %c0_i32, %c0_i32_0 : i32, i32
  }
  func.func @transform_3(%arg0: i32) -> (i32, i32) {
    %c0_i32 = arith.constant 0 : i32
    %c0_i32_0 = arith.constant 0 : i32
    %c0_i32_1 = arith.constant 0 : i32
    return %c0_i32, %c0_i32_0 : i32, i32
  }
  func.func @transform_4(%arg0: i32) -> (i32, i32) {
    %c0_i32 = arith.constant 0 : i32
    %c0_i32_0 = arith.constant 0 : i32
    %c0_i32_1 = arith.constant 0 : i32
    return %c0_i32, %c0_i32_0 : i32, i32
  }
  func.func @transform_5(%arg0: i32) -> (i32, i32) {
    %c0_i32 = arith.constant 0 : i32
    %c0_i32_0 = arith.constant 0 : i32
    %c0_i32_1 = arith.constant 0 : i32
    return %c0_i32, %c0_i32_0 : i32, i32
  }
  func.func @transform_6(%arg0: i32) -> (i32, i32) {
    %c0_i32 = arith.constant 0 : i32
    %c0_i32_0 = arith.constant 0 : i32
    %c0_i32_1 = arith.constant 0 : i32
    return %c0_i32, %c0_i32_0 : i32, i32
  }
  func.func @transform_7(%arg0: i32) -> (i32, i32, i32) {
    %c0_i32 = arith.constant 0 : i32
    %c0_i32_0 = arith.constant 0 : i32
    %c0_i32_1 = arith.constant 0 : i32
    return %arg0, %c0_i32, %c0_i32_0 : i32, i32, i32
  }
}

</mosaic_0001>

<bundles_post_ra>
// kernel: basicconv2_forward.3
= control target key start
LH: loop header
LB: loop body
LE: loop exit
PB: predicated region body
PF: predicated region fallthrough
CT: control target
= control target key end

     0   :  { %s833_s24 = smov 0   ;;  %s999_s0 = inlined_call_operand.vmem [shape: f32[2,72,128], index: 0, kind: input, shape index: {}, may-alias: {0,7}]   ;;  %s1000_s1 = inlined_call_operand.vmem [shape: f32[2,128], index: 1, kind: input, shape index: {}]   ;;  %s1001_s2 = inlined_call_operand.vmem [shape: f32[1,128], index: 2, kind: input, shape index: {}]   ;;  %s1002_s3 = inlined_call_operand.vmem [shape: f32[1,128], index: 3, kind: input, shape index: {}]   ;;  %s1003_s4 = inlined_call_operand.vmem [shape: f32[128,8], index: 4, kind: input, shape index: {}]   ;;  %s1004_s5 = inlined_call_operand.vmem [shape: f32[8,128], index: 5, kind: input, shape index: {}]   ;;  %s1005_s6 = inlined_call_operand.vmem [shape: f32[72,1], index: 6, kind: input, shape index: {}]   ;;  %s1006_s7 = inlined_call_operand.vmem [shape: f32[2,72,128], index: 7, kind: output, shape index: {}, may-alias: {0,7}]  }
   0x1 LB: > { %s666_s25 = sadd.s32 4294967295, %s787_s24   ;;  %p670_p0 = scmp.ge.s32.totalorder %s787_s24, 1  ;;  %s787_s24 = sphi %s833_s24, %s17_s24  }
   0x2   : > { %p237_p1 = scmp.lt.s32.totalorder %s787_s24, 3 }
   0x4   : > { %p238_p2 = pnand %p670_p0, %p237_p1 }
   0x5   : > { %v345_v0 = vld [vmem:[%s1005_s6 + $0x10] sm:$0xff] (!%p238_p2)  ;;  %v343_v1 = vld [vmem:[%s1005_s6] sm:$0xff] (!%p238_p2)  ;;  %v789_v2 = vmov (!%p238_p2), 0   ;;  %v346_v3 = vld [vmem:[%s1005_s6 + $0x18] sm:$0xff] (!%p238_p2)  ;;  %v790_v10 = vmov (!%p238_p2), 0.0|0.0   ;;  %vm791_vm0 = vmmov (!%p238_p2), 0   ;;  %v305_v36 = vlaneseq (!%p238_p2) }
   0x6   : > { %241 = sbr.rel (%p238_p2) target bundleno = 632 (0x278), region = 48  ;;  %776 = vset.pattern.permute.xlu1 (!%p238_p2), %v789_v2  ;;  %775 = vset.pattern.permute.xlu0 (!%p238_p2), %v789_v2  ;;  %v344_v4 = vld [vmem:[%s1005_s6 + $0x8] sm:$0xff] (!%p238_p2)  ;;  %v421_v5 = vld [vmem:[%s1003_s4] sm:$0xff] (!%p238_p2)  ;;  %v423_v11 = vld [vmem:[%s1003_s4 + $0x10] sm:$0xff] (!%p238_p2)  ;;  %v792_v31 = vmov (!%p238_p2), 0.0   ;;  %p269_p3 = scmp.lt.s32.totalorder (!%p238_p2), %s666_s25, 1 }
   0x7   : > { %364 = vperm.xlu1 (!%p238_p2), %776, %v345_v0   ;;  %354 = vperm.xlu0 (!%p238_p2), %775, %v343_v1   ;;  %v422_v6 = vld [vmem:[%s1003_s4 + $0x8] sm:$0xff] (!%p238_p2)  ;;  %v347_v9 = vld [vmem:[%s1005_s6 + $0x20] sm:$0xff] (!%p238_p2)  ;;  %v424_v12 = vld [vmem:[%s1003_s4 + $0x18] sm:$0xff] (!%p238_p2)  ;;  %v923_v37 = vshrl.u32 (!%p238_p2), %v305_v36, 7  ;;  %vm509_vm1 = vcmask (!%p238_p2), 64512  }
   0x8   : > { %v739_v7 = vpack.c.bf16 (!%p238_p2), %v422_v6, %v421_v5  ;;  %v348_v8 = vld [vmem:[%s1005_s6 + $0x28] sm:$0xff] (!%p238_p2)  ;;  %738 = vmatprep.subr.bf16.mxu0 (!%p238_p2), %v790_v10  ;;  %v350_v13 = vld [vmem:[%s1005_s6 + $0x38] sm:$0xff] (!%p238_p2)  ;;  %v349_v14 = vld [vmem:[%s1005_s6 + $0x30] sm:$0xff] (!%p238_p2)  ;;  %v742_v15 = vpack.c.bf16 (!%p238_p2), %v424_v12, %v423_v11  ;;  %730 = vmatprep.mubr.msk.f32.mxu0 (!%p238_p2), %vm791_vm0, %v792_v31 }
   0x9   : > { %v425_v16 = vld [vmem:[%s1003_s4 + $0x20] sm:$0xff] (!%p238_p2)  ;;  %v426_v17 = vld [vmem:[%s1003_s4 + $0x28] sm:$0xff] (!%p238_p2)  ;;  %v427_v20 = vld [vmem:[%s1003_s4 + $0x30] sm:$0xff] (!%p238_p2)  ;;  %733 = vmatprep.subr.mxu1 (!%p238_p2), %v792_v31  ;;  %735 = vmatprep.mubr.msk.f32.mxu1 (!%p238_p2), %vm791_vm0, %v792_v31  ;;  %v307_v41 = vsub.s32 (!%p238_p2), 0, %v923_v37 }
   0xa   : > { %740 = vmatpush3.bf16.msra.mxu0 (!%p238_p2), %v739_v7  ;;  %v351_v18 = vld [vmem:[%s1005_s6 + $0x40] sm:$0xff] (!%p238_p2)  ;;  %v745_v19 = vpack.c.bf16 (!%p238_p2), %v426_v17, %v425_v16  ;;  %v428_v21 = vld [vmem:[%s1003_s4 + $0x38] sm:$0xff] (!%p238_p2)  ;;  %v430_v24 = vld [vmem:[%s1003_s4 + $0x48] sm:$0xff] (!%p238_p2) }
   0xb   : > { %369 = vperm.xlu1 (!%p238_p2), %776, %v346_v3   ;;  %359 = vperm.xlu0 (!%p238_p2), %775, %v344_v4   ;;  %v748_v22 = vpack.c.bf16 (!%p238_p2), %v428_v21, %v427_v20  ;;  %v429_v23 = vld [vmem:[%s1003_s4 + $0x40] sm:$0xff] (!%p238_p2)  ;;  %v431_v26 = vld [vmem:[%s1003_s4 + $0x50] sm:$0xff] (!%p238_p2)  ;;  %v432_v27 = vld [vmem:[%s1003_s4 + $0x58] sm:$0xff] (!%p238_p2) }
   0xc   : > { %741 = vmatprep.subr.bf16.mxu0 (!%p238_p2), %v790_v10  ;;  %v751_v25 = vpack.c.bf16 (!%p238_p2), %v430_v24, %v429_v23  ;;  %v754_v28 = vpack.c.bf16 (!%p238_p2), %v432_v27, %v431_v26  ;;  %v433_v29 = vld [vmem:[%s1003_s4 + $0x60] sm:$0xff] (!%p238_p2)  ;;  %v434_v30 = vld [vmem:[%s1003_s4 + $0x68] sm:$0xff] (!%p238_p2)  ;;  %v435_v33 = vld [vmem:[%s1003_s4 + $0x70] sm:$0xff] (!%p238_p2) }
   0xd   : > { %v757_v32 = vpack.c.bf16 %v434_v30, %v433_v29  ;;  %v436_v34 = vld [vmem:[%s1003_s4 + $0x78] sm:$0xff]  ;;  %s1008_s25 = smov (!%p269_p3, %s666_s25), 1  ;;  %v289_v38 = vld [vmem:[%s1000_s1 + $0x1] sm:$0x1]  ;;  %v303_v39 = vld [vmem:[%s1001_s2] sm:$0x1] }
   0xe   : > { %743 = vmatpush3.bf16.msra.mxu0 %v742_v15  ;;  %v760_v35 = vpack.c.bf16 %v436_v34, %v435_v33  ;;  %s762_s11 = smul.u32 72, %s1008_s25  ;;  %v304_v40 = vmul.f32 %v303_v39, %v289_v38  ;;  %v673_v42 = vld [vmem:[%s1000_s1] ss:$0 sm:$0xff] }
   0xf   : > { %379 = vperm.xlu1 %776, %v348_v8   ;;  %374 = vperm.xlu0 %775, %v347_v9   ;;  %v674_v56 = vld [vmem:[%s1002_s3] ss:$0 sm:$0xff] }
  0x10   : > { %744 = vmatprep.subr.bf16.mxu0 %v790_v10  ;;  %s936_s18 = scalar_lea.vmem %s999_s0, %s762_s11  ;;  %v308_v46 = vrot.slane %v304_v40, %v307_v41  ;;  %s278_s29 = scalar_lea.vmem %s1006_s7, %s762_s11 }
  0x11   : > { %v279_v43 = vld [vmem:[%s936_s18] sm:$0xff]  ;;  %v280_v44 = vld [vmem:[%s936_s18 + $0x8] sm:$0xff]  ;;  %v281_v45 = vld [vmem:[%s936_s18 + $0x10] sm:$0xff] }
  0x12   : > { %746 = vmatpush3.bf16.msra.mxu0 %v745_v19  ;;  %v294_v47 = vsub.f32 %v279_v43, %v673_v42  ;;  %v295_v48 = vsub.f32 %v280_v44, %v673_v42  ;;  %v282_v49 = vld [vmem:[%s936_s18 + $0x18] sm:$0xff]  ;;  %v296_v50 = vsub.f32 %v281_v45, %v673_v42  ;;  %v283_v51 = vld [vmem:[%s936_s18 + $0x20] sm:$0xff]  ;;  %v284_v55 = vld [vmem:[%s936_s18 + $0x28] sm:$0xff] }
  0x13   : > { %389 = vperm.xlu1 %776, %v350_v13   ;;  %384 = vperm.xlu0 %775, %v349_v14   ;;  %v297_v53 = vsub.f32 %v282_v49, %v673_v42  ;;  %v298_v57 = vsub.f32 %v283_v51, %v673_v42  ;;  %v299_v59 = vsub.f32 %v284_v55, %v673_v42  ;;  %v285_v60 = vld [vmem:[%s936_s18 + $0x30] sm:$0xff]  ;;  %v286_v1 = vld [vmem:[%s936_s18 + $0x38] sm:$0xff]  ;;  %v287_v7 = vld [vmem:[%s936_s18 + $0x40] sm:$0xff] }
  0x14   : > { %747 = vmatprep.subr.bf16.mxu0 %v790_v10  ;;  %v309_v52 = vmul.f32 %v308_v46, %v294_v47  ;;  %v310_v54 = vmul.f32 %v308_v46, %v295_v48  ;;  %v311_v58 = vmul.f32 %v308_v46, %v296_v50  ;;  %v300_v3 = vsub.f32 %v285_v60, %v673_v42 }
  0x15   : > { %v312_v62 = vmul.f32 %v308_v46, %v297_v53  ;;  %v313_v0 = vmul.f32 %v308_v46, %v298_v57  ;;  %v314_v6 = vmul.f32 %v308_v46, %v299_v59  ;;  %v301_v11 = vsub.f32 %v286_v1, %v673_v42 }
  0x16   : > { %749 = vmatpush3.bf16.msra.mxu0 %v748_v22  ;;  %v954_v61 = vadd.f32 %v674_v56, %v309_v52  ;;  %v956_v63 = vadd.f32 %v674_v56, %v310_v54  ;;  %v959_v2 = vadd.f32 %v674_v56, %v311_v58  ;;  %v315_v14 = vmul.f32 %v308_v46, %v300_v3 }
  0x17   : > { %394 = vperm.xlu0 %775, %v351_v18   ;;  %750 = vmatprep.subr.bf16.mxu0 %v790_v10  ;;  %v963_v9 = vadd.f32 %v674_v56, %v312_v62  ;;  %v966_v12 = vadd.f32 %v674_v56, %v313_v0  ;;  %v302_v15 = vsub.f32 %v287_v7, %v673_v42  ;;  %v508_v62 = vld [vmem:[%s1004_s5] sm:$0xff] }
  0x18   : > { %v334_v8 = vmax.f32 %v954_v61, 0.0  ;;  %v336_v13 = vmax.f32 %v959_v2, 0.0  ;;  %v969_v18 = vadd.f32 %v674_v56, %v314_v6  ;;  %v316_v22 = vmul.f32 %v308_v46, %v301_v11  ;;  %734 = vmatpush3.msra.mxu1 %v508_v62 }
  0x19   : > { %v337_v20 = vmax.f32 %v963_v9, 0.0  ;;  %v338_v23 = vmax.f32 %v966_v12, 0.0  ;;  %v331_v26 = vadd.f32 %v674_v56, %v315_v14  ;;  %v317_v27 = vmul.f32 %v308_v46, %v302_v15 }
  0x1a   : > { %752 = vmatpush3.bf16.msra.mxu0 %v751_v25  ;;  %v332_v33 = vadd.f32 %v674_v56, %v316_v22 }
  0x1b   : > { %753 = vmatprep.subr.bf16.mxu0 %v790_v10  ;;  %v340_v36 = vmax.f32 %v331_v26, 0.0  ;;  %v333_v38 = vadd.f32 %v674_v56, %v317_v27 }
  0x1c   : > { %v341_v43 = vmax.f32 %v332_v33, 0.0 }
  0x1d   : > { %v342_v48 = vmax.f32 %v333_v38, 0.0 }
  0x1e   : > { %755 = vmatpush3.bf16.msra.mxu0 %v754_v28 }
  0x1f   : > { %756 = vmatprep.subr.bf16.mxu0 %v790_v10 }
  0x22   : > { %758 = vmatpush3.bf16.msra.mxu0 %v757_v32  ;;  %v339_v32 = vmax.f32 %v969_v18, 0.0 }
  0x23   : > { %759 = vmatprep.subr.bf16.mxu0 %v790_v10  ;;  %v335_v10 = vmax.f32 %v956_v63, 0.0 }
  0x26   : > { %761 = vmatpush3.bf16.msra.mxu0 %v760_v35 }
  0x86   : > { %v365_v4 = vpop.permute.xlu1 %364  ;;  %v355_v5 = vpop.permute.xlu0 %354 }
  0x87   : > { %v397_v19 = vmul.f32 %v355_v5, %v334_v8  ;;  %v399_v24 = vmul.f32 %v365_v4, %v336_v13 }
  0x8a   : > { %v370_v16 = vpop.permute.xlu1 %369  ;;  %v360_v17 = vpop.permute.xlu0 %359 }
  0x8b   : > { %v398_v21 = vmul.f32 %v360_v17, %v335_v10  ;;  %v400_v30 = vmul.f32 %v370_v16, %v337_v20 }
  0x8d   : > { %v406_v25 = vadd.f32 %v398_v21, %v397_v19 }
  0x8e   : > { %v380_v28 = vpop.permute.xlu1 %379  ;;  %v375_v29 = vpop.permute.xlu0 %374 }
  0x8f   : > { %v407_v31 = vadd.f32 %v406_v25, %v399_v24  ;;  %v401_v34 = vmul.f32 %v375_v29, %v338_v23  ;;  %v402_v40 = vmul.f32 %v380_v28, %v339_v32 }
  0x91   : > { %v408_v35 = vadd.f32 %v407_v31, %v400_v30 }
  0x92   : > { %v385_v39 = vpop.permute.xlu0 %384  ;;  %v390_v44 = vpop.permute.xlu1 %389 }
  0x93   : > { %v409_v42 = vadd.f32 %v408_v35, %v401_v34  ;;  %v403_v45 = vmul.f32 %v385_v39, %v340_v36  ;;  %v404_v49 = vmul.f32 %v390_v44, %v341_v43 }
  0x95   : > { %v410_v47 = vadd.f32 %v409_v42, %v402_v40 }
  0x96   : > { %v395_v46 = vpop.permute.xlu0 %394 }
  0x97   : > { %v411_v50 = vadd.f32 %v410_v47, %v403_v45  ;;  %v405_v51 = vmul.f32 %v395_v46, %v342_v48 }
  0x99   : > { %v412_v52 = vadd.f32 %v411_v50, %v404_v49 }
  0x9b   : > { %v413_v53 = vadd.f32 %v412_v52, %v405_v51 }
  0x9d   : > { %v414_v54 = vrot.slane %v413_v53, 4 }
  0x9f   : > { %v415_v55 = vadd.f32 %v414_v54, %v413_v53 }
  0xa1   : > { %v416_v57 = vrot.slane %v415_v55, 2 }
  0xa3   : > { %v417_v58 = vadd.f32 %v416_v57, %v415_v55 }
  0xa5   : > { %v418_v59 = vrot.slane %v417_v58, 1 }
  0xa7   : > { %v419_v56 = vadd.f32 %v418_v59, %v417_v58 }
  0xa9   : > { %v420_v60 = vmul.f32 0.015625, %v419_v56 }
  0xab   : > { %731 = vmatmul.mubr.f32.vlgmr.msra.gmra.mrb[0].mxu0 %v420_v60 }
 0x17e   : > { %v503_v0 = vpop.f32.mrb[0].mxu0 }
 0x17f   : > { %v507_v1 = vmax.f32 %v503_v0, 0.0  ;;  %v732_v3 = vpop.f32.mrb[1].mxu0 }
 0x181   : > { %736 = vmatmul.mubr.msk.f32.vlgmr.msra.gmra.mrb[0].mxu1 %vm509_vm1, %v507_v1 }
 0x254   : > { %v579_v4 = vpop.f32.mrb[0].mxu1 }
 0x255   : > { %v676_v5 = vmul.f32 -1.442695, %v579_v4  ;;  %v737_v6 = vpop.f32.mrb[1].mxu1 }
 0x257   : > { %777 = vpow2.f32 %v676_v5 }
 0x261   : > { %v778_v7 = vpop.eup %777 }
 0x262   : > { %v586_v9 = vadd.f32 1.0, %v778_v7 }
 0x264   : > { %779 = vrcp.f32 %v586_v9 }
 0x26e   : > { %v780_v11 = vpop.eup %779 }
 0x26f   : > { %v592_v12 = vrot.slane %v780_v11, %v307_v41 }
 0x271   : > { %v593_v14 = vmul.f32 %v592_v12, %v334_v8  ;;  %v594_v15 = vmul.f32 %v592_v12, %v335_v10  ;;  %v595_v16 = vmul.f32 %v592_v12, %v336_v13  ;;  %v596_v17 = vmul.f32 %v592_v12, %v337_v20 }
 0x272   : > { %v597_v18 = vmul.f32 %v592_v12, %v338_v23  ;;  %v598_v19 = vmul.f32 %v592_v12, %v339_v32  ;;  %v599_v21 = vmul.f32 %v592_v12, %v340_v36  ;;  %v600_v37 = vmul.f32 %v592_v12, %v341_v43 }
 0x273   : > { %v601_v41 = vmul.f32 %v592_v12, %v342_v48  ;;  %602 = vst [vmem:[%s278_s29] sm:$0xff] %v593_v14  ;;  %603 = vst [vmem:[%s278_s29 + $0x8] sm:$0xff] %v594_v15 }
 0x274   : > { %604 = vst [vmem:[%s278_s29 + $0x10] sm:$0xff] %v595_v16  ;;  %605 = vst [vmem:[%s278_s29 + $0x18] sm:$0xff] %v596_v17 }
 0x275   : > { %606 = vst [vmem:[%s278_s29 + $0x20] sm:$0xff] %v597_v18  ;;  %607 = vst [vmem:[%s278_s29 + $0x28] sm:$0xff] %v598_v19 }
 0x276   : > { %608 = vst [vmem:[%s278_s29 + $0x30] sm:$0xff] %v599_v21  ;;  %609 = vst [vmem:[%s278_s29 + $0x38] sm:$0xff] %v600_v37 }
 0x277   : > { %610 = vst [vmem:[%s278_s29 + $0x40] sm:$0xff] %v601_v41 }
 0x278 PF: > { %s17_s24 = sadd.s32 1, %s787_s24  }
 0x279   : > { %p14_p4 = scmp.ge.s32.totalorder %s17_s24, 4  }
 0x27b   :  { %16 = sbr.rel (!%p14_p4) target bundleno = 1 (0x1), region = 78 }

// kernel: basicconv2_forward.2
= control target key start
LH: loop header
LB: loop body
LE: loop exit
PB: predicated region body
PF: predicated region fallthrough
CT: control target
= control target key end

     0   :  { %s1250_s15 = smov 0   ;;  %s1469_s0 = inlined_call_operand.vmem [shape: bf16[2,88,16], index: 0, kind: input, shape index: {}]   ;;  %s1470_s1 = inlined_call_operand.vmem [shape: bf16[4,16,128], index: 1, kind: input, shape index: {}]   ;;  %s1471_s2 = inlined_call_operand.vmem [shape: f32[72,1], index: 2, kind: input, shape index: {}]   ;;  %s1472_s3 = inlined_call_operand.vmem [shape: f32[2,72,128], index: 3, kind: output, shape index: {0}]   ;;  %s1473_s4 = inlined_call_operand.vmem [shape: f32[2,128], index: 4, kind: output, shape index: {1}]  }
   0x1 LB: > { %s1256_s16 = sadd.s32 4294967295, %s1219_s15   ;;  %p969_p0 = scmp.ge.s32.totalorder %s1219_s15, 1  ;;  %s1219_s15 = sphi %s1250_s15, %s15_s15  }
   0x2   : > { %p160_p1 = scmp.lt.s32.totalorder %s1219_s15, 3 }
   0x4   : > { %p161_p2 = pnand %p969_p0, %p160_p1 }
   0x5   : > { %p186_p3 = scmp.lt.s32.totalorder (!%p161_p2), %s1256_s16, 1  ;;  %p972_p4 = scmp.ne.s32.totalorder (!%p161_p2), %s1256_s16, 0 }
   0x6   : > { %164 = sbr.rel (%p161_p2) target bundleno = 367 (0x16f), region = 32 }
   0xd   : > { %s187_s17 = scalar_select %p186_p3, %s1256_s16, 1 }
   0xe   : > { %200 = sbr.rel (%p972_p4) target bundleno = 21 (0x15), region = 36  ;;  %v1221_v0 = vmov (!%p972_p4), 0.0  }
   0xf   : > { %s1179_s18 = smul.u32 44, %s187_s17  ;;  %201 = vst [vmem:[#allocation2] sm:$0x1] (!%p972_p4), %v1221_v0  ;;  %202 = vst [vmem:[#allocation3] sm:$0x1] (!%p972_p4), %v1221_v0 }
  0x10   : > { %s1180_s19 = smul.u32 72, %s187_s17 }
  0x11   : > { %s1265_s22 = scalar_lea.vmem %s1469_s0, %s1179_s18 }
  0x12   : > { %s1270_s25 = scalar_lea.vmem %s1472_s3, %s1180_s19 }
  0x15 PF: > { %v1195_v1 = vld [vmem:[%s1470_s1 + $0x8] sm:$0xff]   ;;  %v1222_v2 = vmov 0.0   ;;  %v1196_v3 = vld [vmem:[%s1470_s1 + $0x10] sm:$0xff]   ;;  %vm1223_vm0 = vmmov 0   ;;  %v1285_v4 = vld [vmem:[%s1265_s22] sm:$0xff]   ;;  %vm289_vm2 = vcmask 130048  }
  0x16   : > { %1042 = vmatprep.subr.bf16.mxu1 %v1222_v2  ;;  %1086 = vmatprep.subr.bf16.mxu0 %v1222_v2  ;;  %v1288_v5 = vld [vmem:[%s1265_s22 + $0x8] sm:$0xff]   ;;  %vm243_vm1 = vsmask.f32 7424  ;;  %v245_v6 = vshrl.u32 %v1285_v4, 16  ;;  %v247_v7 = vshll.u32 %v1285_v4, 16  ;;  %v1199_v17 = vld [vmem:[%s1470_s1] sm:$0xff]  }
  0x17   : > { %1043 = vmatpush3.bf16.msra.mxu1 %v1195_v1  ;;  %1044 = vmatprep.mubr.msk.bf16.mxu1 %vm1223_vm0, %v1222_v2  ;;  %v252_v8 = vshll.u32 %v1288_v5, 16  ;;  %v467_v9 = vld [vmem:[%s1265_s22 + $0x4] sm:$0xf]  ;;  %v1298_v10 = vld [vmem:[%s1265_s22 + $0xc] sm:$0xff]   ;;  %v1301_v11 = vld [vmem:[%s1265_s22 + $0x8] sm:$0xf] }
  0x18   : > { %1087 = vmatpush3.bf16.msra.mxu0 %v1196_v3  ;;  %1064 = vmatprep.subr.bf16.mxu1 %v1222_v2  ;;  %v249_v12 = vrot.slane %v247_v7, 1  ;;  %v995_v14 = vcombine.low %v467_v9, %v1301_v11  ;;  %v513_v15 = vshll.u32 %v1298_v10, 16  ;;  %v1309_v20 = vld [vmem:[%s1265_s22 + $0x10] sm:$0xff]   ;;  %v256_v22 = vshrl.u32 %v1288_v5, 16  ;;  %v1202_v29 = vld [vmem:[%s1470_s1 + $0x18] sm:$0xff]   ;;  %v774_v49 = vld [vmem:[%s1471_s2] sm:$0xff] }
  0x19   : > { %1088 = vmatprep.mubr.msk.bf16.mxu0 %vm1223_vm0, %v1222_v2  ;;  %1108 = vmatprep.subr.bf16.mxu0 %v1222_v2  ;;  %v254_v13 = vrot.slane %v252_v8, 1  ;;  %v1313_v23 = vld [vmem:[%s1265_s22 + $0x14] sm:$0xff]   ;;  %v260_v26 = vshll.u32 %v1309_v20, 16  ;;  %v517_v27 = vshrl.u32 %v1298_v10, 16  ;;  %v264_v35 = vshrl.u32 %v1309_v20, 16  ;;  %v1336_v40 = vld [vmem:[%s1265_s22 + $0x1c] sm:$0xff]  }
  0x1a   : > { %v250_v16 = vor.u32 %v249_v12, %v245_v6  ;;  %v506_v18 = vshrl.u32 %v995_v14, 16  ;;  %v508_v19 = vshll.u32 %v995_v14, 16  ;;  %v515_v21 = vrot.slane %v513_v15, 1  ;;  %v1326_v33 = vld [vmem:[%s1265_s22 + $0x18] sm:$0xff]   ;;  %v1339_v41 = vld [vmem:[%s1265_s22 + $0x20] sm:$0xf] }
  0x1b   : > { %v258_v30 = vor.u32 %v256_v22, %v254_v13  ;;  %v262_v31 = vrot.slane %v260_v26, 1  ;;  %v521_v32 = vshll.u32 %v1313_v23, 16  ;;  %v268_v39 = vshll.u32 %v1326_v33, 16  ;;  %v214_v42 = vld [vmem:[%s1265_s22 + $0x24] sm:$0x1]  ;;  %v776_v52 = vld [vmem:[%s1471_s2 + $0x10] sm:$0xff] }
  0x1c   : > { %v255_v24 = vsel %vm243_vm1, %v250_v16, %v254_v13  ;;  %v510_v25 = vrot.slane %v508_v19, 1  ;;  %v519_v37 = vor.u32 %v517_v27, %v515_v21  ;;  %v525_v44 = vshrl.u32 %v1313_v23, 16  ;;  %v1361_v57 = vld [vmem:[%s1265_s22 + $0x24] sm:$0x1f]   ;;  %v777_v60 = vld [vmem:[%s1471_s2 + $0x18] sm:$0xff]  ;;  %v780_v9 = vld [vmem:[%s1471_s2 + $0x30] sm:$0xff] }
  0x1d   : > { %1045 = vmatmul.mubr.msk.bf16.vlgmr.msra.gmra.mrb[0].mxu1 %vm289_vm2, %v255_v24  ;;  %v263_v36 = vsel %vm243_vm1, %v258_v30, %v262_v31  ;;  %v523_v38 = vrot.slane %v521_v32, 1  ;;  %v266_v43 = vor.u32 %v264_v35, %v262_v31  ;;  %v270_v46 = vrot.slane %v268_v39, 1  ;;  %v775_v58 = vld [vmem:[%s1471_s2 + $0x8] sm:$0xff]  ;;  %v778_v1 = vld [vmem:[%s1471_s2 + $0x20] sm:$0xff]  ;;  %v781_v13 = vld [vmem:[%s1471_s2 + $0x38] sm:$0xff]  ;;  %p1015_p5 = scmp.ne.s32.totalorder %s1256_s16, 1 }
  0x1e   : > { %1065 = vmatpush3.bf16.msra.mxu1 %v1199_v17  ;;  %v511_v28 = vor.u32 %v510_v25, %v506_v18  ;;  %1048 = vmatprep.mubr.msk.bf16.mxu1 %vm1223_vm0, %v1222_v2  ;;  %v529_v47 = vshll.u32 %v1336_v40, 16  ;;  %v979_v48 = vcombine.low %v1339_v41, %v214_v42  ;;  %v272_v50 = vshrl.u32 %v1326_v33, 16  ;;  %v779_v3 = vld [vmem:[%s1471_s2 + $0x28] sm:$0xff]  ;;  %v782_v15 = vld [vmem:[%s1471_s2 + $0x40] sm:$0xff] }
  0x1f   : > { %v524_v45 = vsel %vm243_vm1, %v519_v37, %v523_v38  ;;  %v1224_v51 = vmov 0   ;;  %v271_v53 = vsel %vm243_vm1, %v266_v43, %v270_v46  ;;  %v527_v54 = vor.u32 %v525_v44, %v523_v38  ;;  %v646_v18 = vld [vmem:[%s1265_s22 + $0x4] sm:$0xe] }
  0x20   : > { %v516_v34 = vsel %vm243_vm1, %v511_v28, %v515_v21  ;;  %1193 = vset.pattern.permute.xlu0 %v1224_v51  ;;  %v531_v55 = vrot.slane %v529_v47, 1  ;;  %v276_v56 = vshll.u32 %v979_v48, 16  ;;  %1194 = vset.pattern.permute.xlu1 %v1224_v51  ;;  %v274_v59 = vor.u32 %v272_v50, %v270_v46 }
  0x21   : > { %1089 = vmatmul.mubr.msk.bf16.vlgmr.msra.gmra.mrb[0].mxu0 %vm289_vm2, %v516_v34  ;;  %786 = vperm.xlu0 %1193, %v774_v49   ;;  %v533_v63 = vshrl.u32 %v1336_v40, 16  ;;  %v537_v0 = vshll.u32 %v1361_v57, 16  ;;  %v280_v12 = vshrl.u32 %v979_v48, 16  ;;  %v541_v17 = vshrl.u32 %v1361_v57, 16 }
  0x22   : > { %1109 = vmatpush3.bf16.msra.mxu0 %v1202_v29  ;;  %1092 = vmatprep.mubr.msk.bf16.mxu0 %vm1223_vm0, %v1222_v2  ;;  %v532_v61 = vsel %vm243_vm1, %v527_v54, %v531_v55  ;;  %v278_v62 = vrot.slane %v276_v56, 1  ;;  %v1008_v21 = vcombine.low %v646_v18, %v1301_v11  ;;  %v655_v24 = vrot.slane %v1298_v10, 1 }
  0x23   : > { %796 = vperm.xlu1 %1194, %v776_v52   ;;  %v535_v7 = vor.u32 %v533_v63, %v531_v55  ;;  %v539_v8 = vrot.slane %v537_v0, 1  ;;  %vm653_vm3 = vcmask 1046528   ;;  %v657_v11 = vrot.slane %v1313_v23, 1 }
  0x24   : > { %v279_v6 = vsel %vm243_vm1, %v274_v59, %v278_v62  ;;  %v282_v16 = vor.u32 %v280_v12, %v278_v62  ;;  %v654_v22 = vrot.slane %v1008_v21, 1 }
  0x25   : > { %1049 = vmatmul.mubr.msk.bf16.gmra.mrb[4].mxu1 %vm289_vm2, %v263_v36  ;;  %791 = vperm.xlu0 %1193, %v775_v58   ;;  %v540_v14 = vsel %vm243_vm1, %v535_v7, %v539_v8  ;;  %v543_v19 = vor.u32 %v541_v17, %v539_v8  ;;  %v658_v10 = vsel %vm653_vm3, %v655_v24, %v657_v11 }
  0x26   : > { %1052 = vmatprep.mubr.msk.bf16.mxu1 %vm1223_vm0, %v1222_v2  ;;  %v656_v25 = vsel %vm653_vm3, %v654_v22, %v655_v24 }
  0x27   : > { %801 = vperm.xlu1 %1194, %v777_v60  }
  0x29   : > { %1093 = vmatmul.mubr.msk.bf16.gmra.mrb[4].mxu0 %vm289_vm2, %v524_v45  ;;  %806 = vperm.xlu0 %1193, %v778_v1  }
  0x2a   : > { %1096 = vmatprep.mubr.msk.bf16.mxu0 %vm1223_vm0, %v1222_v2 }
  0x2b   : > { %811 = vperm.xlu1 %1194, %v779_v3  }
  0x2d   : > { %1053 = vmatmul.mubr.msk.bf16.gmra.mrb[8].mxu1 %vm289_vm2, %v271_v53  ;;  %816 = vperm.xlu0 %1193, %v780_v9  }
  0x2e   : > { %1056 = vmatprep.mubr.msk.bf16.mxu1 %vm1223_vm0, %v1222_v2 }
  0x2f   : > { %821 = vperm.xlu1 %1194, %v781_v13  }
  0x31   : > { %1097 = vmatmul.mubr.msk.bf16.gmra.mrb[8].mxu0 %vm289_vm2, %v532_v61  ;;  %826 = vperm.xlu0 %1193, %v782_v15  }
  0x32   : > { %1100 = vmatprep.mubr.msk.bf16.mxu0 %vm1223_vm0, %v1222_v2 }
  0x35   : > { %1057 = vmatmul.mubr.msk.bf16.gmra.mrb[12].mxu1 %vm289_vm2, %v279_v6 }
  0x36   : > { %1060 = vmatprep.mubr.msk.bf16.mxu1 %vm1223_vm0, %v1222_v2 }
  0x39   : > { %1101 = vmatmul.mubr.msk.bf16.gmra.mrb[12].mxu0 %vm289_vm2, %v540_v14 }
  0x3a   : > { %1104 = vmatprep.mubr.msk.bf16.mxu0 %vm1223_vm0, %v1222_v2 }
  0x3d   : > { %1061 = vmatmul.mubr.msk.bf16.gmra.mrb[16].mxu1 %vm289_vm2, %v282_v16 }
  0x3e   : > { %1066 = vmatprep.mubr.msk.bf16.mxu1 %vm1223_vm0, %v1222_v2 }
  0x41   : > { %1105 = vmatmul.mubr.msk.bf16.gmra.mrb[16].mxu0 %vm289_vm2, %v543_v19 }
  0x42   : > { %1110 = vmatprep.mubr.msk.bf16.mxu0 %vm1223_vm0, %v1222_v2 }
  0x45   : > { %1067 = vmatmul.mubr.msk.bf16.vlgmr.msra.gmra.mrb[0].mxu1 %vm289_vm2, %v1285_v4  ;;  %v659_v4 = vrot.slane %v1336_v40, 1 }
  0x46   : > { %1070 = vmatprep.mubr.msk.bf16.mxu1 %vm1223_vm0, %v1222_v2 }
  0x47   : > { %v660_v23 = vsel %vm653_vm3, %v657_v11, %v659_v4 }
  0x49   : > { %1111 = vmatmul.mubr.msk.bf16.vlgmr.msra.gmra.mrb[0].mxu0 %vm289_vm2, %v656_v25 }
  0x4a   : > { %1114 = vmatprep.mubr.msk.bf16.mxu0 %vm1223_vm0, %v1222_v2 }
  0x4d   : > { %1071 = vmatmul.mubr.msk.bf16.gmra.mrb[4].mxu1 %vm289_vm2, %v1288_v5  ;;  %v661_v5 = vrot.slane %v1361_v57, 1 }
  0x4e   : > { %1074 = vmatprep.mubr.msk.bf16.mxu1 %vm1223_vm0, %v1222_v2 }
  0x4f   : > { %v662_v26 = vsel %vm653_vm3, %v659_v4, %v661_v5 }
  0x51   : > { %1115 = vmatmul.mubr.msk.bf16.gmra.mrb[4].mxu0 %vm289_vm2, %v658_v10 }
  0x52   : > { %1118 = vmatprep.mubr.msk.bf16.mxu0 %vm1223_vm0, %v1222_v2 }
  0x55   : > { %1075 = vmatmul.mubr.msk.bf16.gmra.mrb[8].mxu1 %vm289_vm2, %v1309_v20  ;;  %v986_v20 = vcombine.low %v1339_v41, %v1339_v41 }
  0x56   : > { %1078 = vmatprep.mubr.msk.bf16.mxu1 %vm1223_vm0, %v1222_v2 }
  0x59   : > { %1119 = vmatmul.mubr.msk.bf16.gmra.mrb[8].mxu0 %vm289_vm2, %v660_v23 }
  0x5a   : > { %1122 = vmatprep.mubr.msk.bf16.mxu0 %vm1223_vm0, %v1222_v2 }
  0x5d   : > { %1079 = vmatmul.mubr.msk.bf16.gmra.mrb[12].mxu1 %vm289_vm2, %v1326_v33 }
  0x5e   : > { %1082 = vmatprep.mubr.msk.bf16.mxu1 %vm1223_vm0, %v1222_v2 }
  0x61   : > { %1123 = vmatmul.mubr.msk.bf16.gmra.mrb[12].mxu0 %vm289_vm2, %v662_v26 }
  0x62   : > { %1126 = vmatprep.mubr.msk.bf16.mxu0 %vm1223_vm0, %v1222_v2 }
  0x65   : > { %1083 = vmatmul.mubr.msk.bf16.gmra.mrb[16].mxu1 %vm289_vm2, %v986_v20 }
  0x69   : > { %1127 = vmatmul.mubr.msk.bf16.gmra.mrb[16].mxu0 %vm289_vm2, %v661_v5 }
  0xa0   : > { %v787_v27 = vpop.permute.xlu0 %786 }
  0xa2   : > { %v797_v2 = vpop.permute.xlu1 %796 }
  0xa4   : > { %v792_v36 = vpop.permute.xlu0 %791 }
  0xa6   : > { %v802_v55 = vpop.permute.xlu1 %801 }
  0xa8   : > { %v807_v16 = vpop.permute.xlu0 %806 }
  0xaa   : > { %v812_v24 = vpop.permute.xlu1 %811 }
 0x118   : > { %v429_v28 = vpop.f32.mrb[0].mxu1 }
 0x119   : > { %v1068_v29 = vpop.f32.mrb[1].mxu1 }
 0x11a   : > { %v432_v30 = vpop.f32.mrb[2].mxu1 }
 0x11b   : > { %v1069_v31 = vpop.f32.mrb[3].mxu1 }
 0x11c   : > { %v718_v32 = vpop.f32.mrb[0].mxu0 }
 0x11d   : > { %v1130_v33 = vadd.f32 %v718_v32, %v429_v28  ;;  %v1112_v34 = vpop.f32.mrb[1].mxu0 }
 0x11e   : > { %v721_v35 = vpop.f32.mrb[2].mxu0  ;;  %v817_v34 = vpop.permute.xlu0 %816 }
 0x11f   : > { %765 = vst [vmem:[%s1270_s25] sm:$0xff] %v1130_v33  ;;  %v855_v37 = vmul.f32 %v1130_v33, %v1130_v33  ;;  %v1131_v38 = vadd.f32 %v721_v35, %v432_v30  ;;  %v1113_v39 = vpop.f32.mrb[3].mxu0  ;;  %v829_v41 = vmul.f32 %v1130_v33, %v787_v27 }
 0x120   : > { %v437_v40 = vpop.f32.mrb[4].mxu1 }
 0x121   : > { %766 = vst [vmem:[%s1270_s25 + $0x8] sm:$0xff] %v1131_v38  ;;  %v830_v42 = vmul.f32 %v1131_v38, %v792_v36  ;;  %v856_v43 = vmul.f32 %v1131_v38, %v1131_v38  ;;  %v1072_v44 = vpop.f32.mrb[5].mxu1  ;;  %v864_v47 = vmul.f32 %v855_v37, %v787_v27 }
 0x122   : > { %v440_v45 = vpop.f32.mrb[6].mxu1 }
 0x123   : > { %v838_v46 = vadd.f32 %v830_v42, %v829_v41  ;;  %v865_v48 = vmul.f32 %v856_v43, %v792_v36  ;;  %v1073_v49 = vpop.f32.mrb[7].mxu1 }
 0x124   : > { %v726_v50 = vpop.f32.mrb[4].mxu0 }
 0x125   : > { %v873_v51 = vadd.f32 %v865_v48, %v864_v47  ;;  %v1132_v52 = vadd.f32 %v726_v50, %v437_v40  ;;  %v1116_v53 = vpop.f32.mrb[5].mxu0 }
 0x126   : > { %v729_v54 = vpop.f32.mrb[6].mxu0 }
 0x127   : > { %767 = vst [vmem:[%s1270_s25 + $0x10] sm:$0xff] %v1132_v52  ;;  %v831_v56 = vmul.f32 %v1132_v52, %v797_v2  ;;  %v857_v57 = vmul.f32 %v1132_v52, %v1132_v52  ;;  %v1133_v58 = vadd.f32 %v729_v54, %v440_v45  ;;  %v1117_v59 = vpop.f32.mrb[7].mxu0 }
 0x128   : > { %v445_v60 = vpop.f32.mrb[8].mxu1 }
 0x129   : > { %v866_v61 = vmul.f32 %v857_v57, %v797_v2  ;;  %768 = vst [vmem:[%s1270_s25 + $0x18] sm:$0xff] %v1133_v58  ;;  %v832_v62 = vmul.f32 %v1133_v58, %v802_v55  ;;  %v839_v63 = vadd.f32 %v838_v46, %v831_v56  ;;  %v858_v0 = vmul.f32 %v1133_v58, %v1133_v58  ;;  %v1076_v1 = vpop.f32.mrb[9].mxu1  ;;  %v822_v2 = vpop.permute.xlu1 %821 }
 0x12a   : > { %v448_v3 = vpop.f32.mrb[10].mxu1 }
 0x12b   : > { %v840_v6 = vadd.f32 %v839_v63, %v832_v62  ;;  %v867_v7 = vmul.f32 %v858_v0, %v802_v55  ;;  %v874_v8 = vadd.f32 %v873_v51, %v866_v61  ;;  %v1077_v9 = vpop.f32.mrb[11].mxu1  ;;  %v827_v55 = vpop.permute.xlu0 %826 }
 0x12c   : > { %v734_v12 = vpop.f32.mrb[8].mxu0 }
 0x12d   : > { %v875_v13 = vadd.f32 %v874_v8, %v867_v7  ;;  %v1134_v14 = vadd.f32 %v734_v12, %v445_v60  ;;  %v1120_v15 = vpop.f32.mrb[9].mxu0 }
 0x12e   : > { %v737_v17 = vpop.f32.mrb[10].mxu0 }
 0x12f   : > { %769 = vst [vmem:[%s1270_s25 + $0x20] sm:$0xff] %v1134_v14  ;;  %v833_v18 = vmul.f32 %v1134_v14, %v807_v16  ;;  %v859_v19 = vmul.f32 %v1134_v14, %v1134_v14  ;;  %v1135_v21 = vadd.f32 %v737_v17, %v448_v3  ;;  %v1121_v22 = vpop.f32.mrb[11].mxu0 }
 0x130   : > { %v453_v25 = vpop.f32.mrb[12].mxu1 }
 0x131   : > { %v841_v11 = vadd.f32 %v840_v6, %v833_v18  ;;  %v868_v10 = vmul.f32 %v859_v19, %v807_v16  ;;  %770 = vst [vmem:[%s1270_s25 + $0x28] sm:$0xff] %v1135_v21  ;;  %v834_v4 = vmul.f32 %v1135_v21, %v812_v24  ;;  %v860_v23 = vmul.f32 %v1135_v21, %v1135_v21  ;;  %v1080_v5 = vpop.f32.mrb[13].mxu1  ;;  %v854_v16 = vld [vmem:[#allocation3] sm:$0x1] }
 0x132   : > { %v456_v26 = vpop.f32.mrb[14].mxu1 }
 0x133   : > { %v876_v20 = vadd.f32 %v875_v13, %v868_v10  ;;  %v842_v27 = vadd.f32 %v841_v11, %v834_v4  ;;  %v869_v28 = vmul.f32 %v860_v23, %v812_v24  ;;  %v1081_v29 = vpop.f32.mrb[15].mxu1  ;;  %v783_v13 = vld [vmem:[#allocation2] sm:$0x1] }
 0x134   : > { %v742_v30 = vpop.f32.mrb[12].mxu0 }
 0x135   : > { %v877_v31 = vadd.f32 %v876_v20, %v869_v28  ;;  %v1136_v32 = vadd.f32 %v742_v30, %v453_v25  ;;  %v1124_v33 = vpop.f32.mrb[13].mxu0 }
 0x136   : > { %v745_v35 = vpop.f32.mrb[14].mxu0 }
 0x137   : > { %771 = vst [vmem:[%s1270_s25 + $0x30] sm:$0xff] %v1136_v32  ;;  %v835_v36 = vmul.f32 %v1136_v32, %v817_v34  ;;  %v861_v37 = vmul.f32 %v1136_v32, %v1136_v32  ;;  %v1137_v38 = vadd.f32 %v745_v35, %v456_v26  ;;  %v1125_v39 = vpop.f32.mrb[15].mxu0 }
 0x138   : > { %v461_v40 = vpop.f32.mrb[16].mxu1 }
 0x139   : > { %v843_v41 = vadd.f32 %v842_v27, %v835_v36  ;;  %v870_v42 = vmul.f32 %v861_v37, %v817_v34  ;;  %772 = vst [vmem:[%s1270_s25 + $0x38] sm:$0xff] %v1137_v38  ;;  %v836_v43 = vmul.f32 %v1137_v38, %v822_v2  ;;  %v862_v44 = vmul.f32 %v1137_v38, %v1137_v38  ;;  %v1084_v45 = vpop.f32.mrb[17].mxu1 }
 0x13a   : > { %v464_v46 = vpop.f32.mrb[18].mxu1 }
 0x13b   : > { %v878_v47 = vadd.f32 %v877_v31, %v870_v42  ;;  %v844_v48 = vadd.f32 %v843_v41, %v836_v43  ;;  %v871_v49 = vmul.f32 %v862_v44, %v822_v2  ;;  %v1085_v50 = vpop.f32.mrb[19].mxu1 }
 0x13c   : > { %v750_v51 = vpop.f32.mrb[16].mxu0 }
 0x13d   : > { %v879_v52 = vadd.f32 %v878_v47, %v871_v49  ;;  %v1138_v53 = vadd.f32 %v750_v51, %v461_v40  ;;  %v1128_v54 = vpop.f32.mrb[17].mxu0 }
 0x13e   : > { %v753_v56 = vpop.f32.mrb[18].mxu0 }
 0x13f   : > { %773 = vst [vmem:[%s1270_s25 + $0x40] sm:$0xff] %v1138_v53  ;;  %v837_v57 = vmul.f32 %v1138_v53, %v827_v55  ;;  %v863_v58 = vmul.f32 %v1138_v53, %v1138_v53  ;;  %v1129_v59 = vpop.f32.mrb[19].mxu0 }
 0x141   : > { %v845_v60 = vadd.f32 %v844_v48, %v837_v57  ;;  %v872_v61 = vmul.f32 %v863_v58, %v827_v55 }
 0x143   : > { %v846_v62 = vrot.slane %v845_v60, 4  ;;  %v880_v63 = vadd.f32 %v879_v52, %v872_v61 }
 0x145   : > { %v847_v0 = vadd.f32 %v846_v62, %v845_v60  ;;  %v881_v1 = vrot.slane %v880_v63, 4 }
 0x147   : > { %v848_v3 = vrot.slane %v847_v0, 2  ;;  %v882_v6 = vadd.f32 %v881_v1, %v880_v63 }
 0x149   : > { %v849_v7 = vadd.f32 %v848_v3, %v847_v0  ;;  %v883_v8 = vrot.slane %v882_v6, 2 }
 0x14b   : > { %v850_v9 = vrot.slane %v849_v7, 1  ;;  %v884_v12 = vadd.f32 %v883_v8, %v882_v6 }
 0x14d   : > { %v851_v14 = vadd.f32 %v850_v9, %v849_v7  ;;  %v885_v15 = vrot.slane %v884_v12, 1  ;;  %892 = sbr.rel (%p1015_p5) target bundleno = 367 (0x16f), region = 40 }
 0x14f   : > { %v852_v17 = vadd.f32 %v851_v14, %v783_v13  ;;  %v886_v18 = vadd.f32 %v885_v15, %v884_v12 }
 0x151   : > { %853 = vst [vmem:[#allocation2] sm:$0x1] %v852_v17  ;;  %v887_v19 = vadd.f32 %v886_v18, %v854_v16 }
 0x153   : > { %888 = vst [vmem:[#allocation3] sm:$0x1] %v887_v19 }
 0x158   : > { %v893_v21 = vld [vmem:[#allocation2] sm:$0x1] }
 0x159   : > { %v894_v24 = vmul.f32 0.0078125, %v893_v21 }
 0x15a   : > { %v895_v22 = vld [vmem:[#allocation3] sm:$0x1] }
 0x15b   : > { %v896_v25 = vmul.f32 0.0078125, %v895_v22  ;;  %v897_v11 = vmul.f32 %v894_v24, %v894_v24  ;;  %902 = vst [vmem:[%s1473_s4] sm:$0x1] %v894_v24 }
 0x15d   : > { %v898_v10 = vsub.f32 %v896_v25, %v897_v11 }
 0x15f   : > { %v899_v4 = vmax.f32 %v898_v10, 0.0 }
 0x161   : > { %v900_v23 = vadd.f32 1e-05, %v899_v4 }
 0x163   : > { %1211 = vrsqrt.f32 %v900_v23 }
 0x16d   : > { %v1212_v5 = vpop.eup %1211 }
 0x16e   : > { %903 = vst [vmem:[%s1473_s4 + $0x1] sm:$0x1] %v1212_v5 }
 0x16f PF: > { %s15_s15 = sadd.s32 1, %s1219_s15  }
 0x170   : > { %p12_p6 = scmp.ge.s32.totalorder %s15_s15, 4  }
 0x172   :  { %14 = sbr.rel (!%p12_p6) target bundleno = 1 (0x1), region = 81 }

</bundles_post_ra>
